<compile_context>
chip_gen: v7x
topology: tpu7x:2x2x1
jax: 0.10.0
libtpu: 0.0.40
codegen_flags: <defaults>
</compile_context>

<pallas_src>
import jax
import jax.numpy as jnp
import numpy as np
from jax.experimental import pallas as pl
from jax.experimental.pallas import tpu as pltpu

_LANE = 128


def _round_up(x, m):
    return ((x + m - 1) // m) * m


def _dft_matrices_fused(H, W):
    """Fused real/imag DFT matrices used to realize rfft2 as matmuls."""
    Wf = W // 2 + 1
    n = np.arange(W)[:, None]
    k = np.arange(Wf)[None, :]
    fw = np.exp(-2j * np.pi * n * k / W)                 # (W, Wf)   rDFT along W
    m = np.arange(H)[:, None]
    l = np.arange(H)[None, :]
    fh = np.exp(-2j * np.pi * m * l / H)                 # (H, H)    full DFT along H
    fw_cat = np.concatenate([fw.real, fw.imag], axis=1)  # (W, 2*Wf) = [Fwr | Fwi]
    fh_cat = np.concatenate([fh.real, fh.imag], axis=0)  # (2*H, H)  = [Fhr ; Fhi]
    # TODO(synk): cast these (and x) to bf16 on v6e/v7x if FFT tolerance allows.
    return jnp.asarray(fw_cat, jnp.float32), jnp.asarray(fh_cat, jnp.float32)


def _rfft2_kernel(x_ref, fw_ref, fh_ref, out_ref):
    """One grid step = P planes.

    x_ref  : (P, H, W)     real input planes
    fw_ref : (W, 2*Wf)     [Fw.real | Fw.imag]   (rDFT along W)
    fh_ref : (2*H, H)      [Fh.real ; Fh.imag]   (full DFT along H)
    out_ref: (P, H, Wpad)  packed [zr | zi | 0-pad], Wpad = round_up(2*Wf, 128)
    """
    P, H, W = x_ref.shape
    Wf = fw_ref.shape[1] // 2

    # --- W stage: one big MXU matmul over all P planes ------------------------
    x = x_ref[...].reshape(P * H, W)                         # leading-dim merge only
    ycat = jnp.dot(x, fw_ref[...],
                   preferred_element_type=jnp.float32)       # (P*H, 2*Wf) = [yr | yi]
    y = ycat.reshape(P, H, 2 * Wf)

    fh = fh_ref[...]                                         # (2*H, H), hoisted

    out_ref[...] = jnp.zeros(out_ref.shape, out_ref.dtype)   # lane-dense block

    # --- H stage: one fused (2H, H) @ (H, 2Wf) matmul per plane ----------------
    for p in range(P):                                       # P is small & static
        t = jnp.dot(fh, y[p], preferred_element_type=jnp.float32)   # (2H, 2Wf)
        tr = t[:H]                                           # Fhr @ [yr | yi]
        ti = t[H:]                                           # Fhi @ [yr | yi]
        zr = tr[:, :Wf] - ti[:, Wf:]                         # Re(Fh @ Y)
        zi = tr[:, Wf:] + ti[:, :Wf]                         # Im(Fh @ Y)
        out_ref[p, :, 0:Wf] = zr
        out_ref[p, :, Wf:2 * Wf] = zi


def _choose_planes_per_step(BC, H, W, Wpad):
    # aim for M = P*H ~ 256 rows for the W-stage matmul (MXU height on v6e/v7x)
    p = max(1, min(BC, pl.cdiv(256, H)))

    # conservative per-step VMEM budget (double-buffered input + output blocks),
    # sized to stay well inside v7x's 32 MiB default scoped VMEM.
    budget = 16 * 1024 * 1024

    def blk_bytes(q):
        return 2 * q * H * W * 4 + 2 * q * H * Wpad * 4

    while p > 1 and blk_bytes(p) > budget:
        p = (p + 1) // 2

    # keep >=2 grid steps (v7x has two TensorCores) once the problem is big enough
    if BC > 1 and pl.cdiv(BC, p) == 1 and BC * H >= 512:
        p = pl.cdiv(BC, 2)
    return p


def sno_forward(x):
    """x: (B, C, H, W) float32 -> (B, C*H*(W//2+1)) complex64 (= rfft2, flattened)."""
    B, C, H, W = x.shape
    Wf = W // 2 + 1
    Wpad = _round_up(2 * Wf, _LANE)
    BC = B * C

    x_flat = x.reshape(BC, H, W).astype(jnp.float32)

    P = _choose_planes_per_step(BC, H, W, Wpad)
    BC_pad = pl.cdiv(BC, P) * P
    if BC_pad != BC:
        x_flat = jnp.pad(x_flat, ((0, BC_pad - BC), (0, 0), (0, 0)))
    grid = (BC_pad // P,)

    fw_cat, fh_cat = _dft_matrices_fused(H, W)

    packed = pl.pallas_call(
        _rfft2_kernel,
        out_shape=jax.ShapeDtypeStruct((BC_pad, H, Wpad), jnp.float32),
        grid_spec=pltpu.PrefetchScalarGridSpec(
            num_scalar_prefetch=0,
            grid=grid,
            in_specs=[
                pl.BlockSpec((P, H, W), lambda i: (i, 0, 0)),     # x planes
                pl.BlockSpec((W, 2 * Wf), lambda i: (0, 0)),      # [Fwr | Fwi]
                pl.BlockSpec((2 * H, H), lambda i: (0, 0)),       # [Fhr ; Fhi]
            ],
            out_specs=pl.BlockSpec((P, H, Wpad), lambda i: (i, 0, 0)),
        ),
        compiler_params=pltpu.CompilerParams(
            dimension_semantics=("parallel",)),
    )(x_flat, fw_cat, fh_cat)

    zr = packed[:BC, :, :Wf]
    zi = packed[:BC, :, Wf:2 * Wf]
    x_f = jax.lax.complex(zr, zi)            # (BC, H, Wf) complex64, pure pack
    x_f = x_f.reshape(B, C, H, Wf)
    # matches `x_f.view(shape[0], -1)` in the reference
    return x_f.reshape(B, -1)


if __name__ == "__main__":
    key = jax.random.PRNGKey(0)
    B, C, H, W = 2, 4, 16, 16
    x = jax.random.normal(key, (B, C, H, W), dtype=jnp.float32)

    out = sno_forward(x)
    out = jax.block_until_ready(out)

    # reference check against XLA's rfft2
    ref = jnp.fft.rfft2(x, axes=(-2, -1)).reshape(B, -1)
    np.testing.assert_allclose(np.asarray(out), np.asarray(ref),
                               rtol=1e-4, atol=1e-4)

    print("KERNEL_OK")
</pallas_src>

<mosaic_0001>
module attributes {stable_mosaic.version = 11 : i64} {
  func.func @_rfft2_kernel(%arg0: i32, %arg1: memref<8x16x16xf32, #tpu.memory_space<vmem>>, %arg2: memref<16x18xf32, #tpu.memory_space<vmem>>, %arg3: memref<32x16xf32, #tpu.memory_space<vmem>>, %arg4: memref<8x16x128xf32, #tpu.memory_space<vmem>>) attributes {dimension_semantics = [#tpu.dimension_semantics<parallel>], iteration_bounds = array<i64: 1>, scalar_prefetch = 0 : i64, scratch_operands = 0 : i64, tpu.core_type = #tpu.core_type<tc>, window_params = [{transform_indices = @transform_0, window_bounds = array<i64: 8, 16, 16>}, {pipeline_mode = #tpu.pipeline_mode<synchronous>, transform_indices = @transform_1, window_bounds = array<i64: 16, 18>}, {pipeline_mode = #tpu.pipeline_mode<synchronous>, transform_indices = @transform_2, window_bounds = array<i64: 32, 16>}, {transform_indices = @transform_3, window_bounds = array<i64: 8, 16, 128>}]} {
    %c0 = arith.constant 0 : index
    %c0_0 = arith.constant 0 : index
    %c0_1 = arith.constant 0 : index
    %0 = vector.load %arg1[%c0, %c0_0, %c0_1] : memref<8x16x16xf32, #tpu.memory_space<vmem>>, vector<8x16x16xf32>
    %1 = vector.shape_cast %0 : vector<8x16x16xf32> to vector<128x16xf32>
    %c0_2 = arith.constant 0 : index
    %c0_3 = arith.constant 0 : index
    %2 = vector.load %arg2[%c0_2, %c0_3] : memref<16x18xf32, #tpu.memory_space<vmem>>, vector<16x18xf32>
    %cst = arith.constant dense<0.000000e+00> : vector<128x18xf32>
    %3 = tpu.matmul %1, %2, %cst {dimension_numbers = #tpu.dot_dimension_numbers<[1], [0], [0], [1], [0, 0, 1, 1], [], []>} : vector<128x16xf32>, vector<16x18xf32>, vector<128x18xf32> -> vector<128x18xf32>
    %4 = vector.shape_cast %3 : vector<128x18xf32> to vector<8x16x18xf32>
    %c0_4 = arith.constant 0 : index
    %c0_5 = arith.constant 0 : index
    %5 = vector.load %arg3[%c0_4, %c0_5] : memref<32x16xf32, #tpu.memory_space<vmem>>, vector<32x16xf32>
    %cst_6 = arith.constant 0.000000e+00 : f32
    %6 = vector.broadcast %cst_6 : f32 to vector<8x16x128xf32>
    %c0_7 = arith.constant 0 : index
    %c0_8 = arith.constant 0 : index
    %c0_9 = arith.constant 0 : index
    %7 = vector.load %arg4[%c0_7, %c0_8, %c0_9] : memref<8x16x128xf32, #tpu.memory_space<vmem>>, vector<8x16x128xf32>
    tpu.vector_store %arg4[%c0_7, %c0_8, %c0_9], %6 {strides = array<i32>} : memref<8x16x128xf32, #tpu.memory_space<vmem>>, vector<8x16x128xf32>,
    %8 = vector.extract_strided_slice %4 {offsets = [0, 0, 0], sizes = [1, 16, 18], strides = [1, 1, 1]} : vector<8x16x18xf32> to vector<1x16x18xf32>
    %9 = vector.shape_cast %8 : vector<1x16x18xf32> to vector<16x18xf32>
    %cst_10 = arith.constant dense<0.000000e+00> : vector<32x18xf32>
    %10 = tpu.matmul %5, %9, %cst_10 {dimension_numbers = #tpu.dot_dimension_numbers<[1], [0], [0], [1], [0, 0, 1, 1], [], []>} : vector<32x16xf32>, vector<16x18xf32>, vector<32x18xf32> -> vector<32x18xf32>
    %11 = vector.extract_strided_slice %10 {offsets = [0, 0], sizes = [16, 18], strides = [1, 1]} : vector<32x18xf32> to vector<16x18xf32>
    %12 = vector.extract_strided_slice %10 {offsets = [16, 0], sizes = [16, 18], strides = [1, 1]} : vector<32x18xf32> to vector<16x18xf32>
    %13 = vector.extract_strided_slice %11 {offsets = [0, 0], sizes = [16, 9], strides = [1, 1]} : vector<16x18xf32> to vector<16x9xf32>
    %14 = vector.extract_strided_slice %12 {offsets = [0, 9], sizes = [16, 9], strides = [1, 1]} : vector<16x18xf32> to vector<16x9xf32>
    %15 = arith.subf %13, %14 : vector<16x9xf32>
    %16 = vector.extract_strided_slice %11 {offsets = [0, 9], sizes = [16, 9], strides = [1, 1]} : vector<16x18xf32> to vector<16x9xf32>
    %17 = vector.extract_strided_slice %12 {offsets = [0, 0], sizes = [16, 9], strides = [1, 1]} : vector<16x18xf32> to vector<16x9xf32>
    %18 = arith.addf %16, %17 : vector<16x9xf32>
    %c0_11 = arith.constant 0 : index
    %c0_12 = arith.constant 0 : index
    %c0_13 = arith.constant 0 : index
    %19 = vector.load %arg4[%c0_11, %c0_12, %c0_13] : memref<8x16x128xf32, #tpu.memory_space<vmem>>, vector<1x16x9xf32>
    %20 = vector.shape_cast %19 : vector<1x16x9xf32> to vector<16x9xf32>
    %21 = vector.shape_cast %15 : vector<16x9xf32> to vector<1x16x9xf32>
    tpu.vector_store %arg4[%c0_11, %c0_12, %c0_13], %21 {strides = array<i32>} : memref<8x16x128xf32, #tpu.memory_space<vmem>>, vector<1x16x9xf32>,
    %c0_14 = arith.constant 0 : index
    %c0_15 = arith.constant 0 : index
    %c9 = arith.constant 9 : index
    %22 = vector.load %arg4[%c0_14, %c0_15, %c9] : memref<8x16x128xf32, #tpu.memory_space<vmem>>, vector<1x16x9xf32>
    %23 = vector.shape_cast %22 : vector<1x16x9xf32> to vector<16x9xf32>
    %24 = vector.shape_cast %18 : vector<16x9xf32> to vector<1x16x9xf32>
    tpu.vector_store %arg4[%c0_14, %c0_15, %c9], %24 {strides = array<i32>} : memref<8x16x128xf32, #tpu.memory_space<vmem>>, vector<1x16x9xf32>,
    %25 = vector.extract_strided_slice %4 {offsets = [1, 0, 0], sizes = [1, 16, 18], strides = [1, 1, 1]} : vector<8x16x18xf32> to vector<1x16x18xf32>
    %26 = vector.shape_cast %25 : vector<1x16x18xf32> to vector<16x18xf32>
    %cst_16 = arith.constant dense<0.000000e+00> : vector<32x18xf32>
    %27 = tpu.matmul %5, %26, %cst_16 {dimension_numbers = #tpu.dot_dimension_numbers<[1], [0], [0], [1], [0, 0, 1, 1], [], []>} : vector<32x16xf32>, vector<16x18xf32>, vector<32x18xf32> -> vector<32x18xf32>
    %28 = vector.extract_strided_slice %27 {offsets = [0, 0], sizes = [16, 18], strides = [1, 1]} : vector<32x18xf32> to vector<16x18xf32>
    %29 = vector.extract_strided_slice %27 {offsets = [16, 0], sizes = [16, 18], strides = [1, 1]} : vector<32x18xf32> to vector<16x18xf32>
    %30 = vector.extract_strided_slice %28 {offsets = [0, 0], sizes = [16, 9], strides = [1, 1]} : vector<16x18xf32> to vector<16x9xf32>
    %31 = vector.extract_strided_slice %29 {offsets = [0, 9], sizes = [16, 9], strides = [1, 1]} : vector<16x18xf32> to vector<16x9xf32>
    %32 = arith.subf %30, %31 : vector<16x9xf32>
    %33 = vector.extract_strided_slice %28 {offsets = [0, 9], sizes = [16, 9], strides = [1, 1]} : vector<16x18xf32> to vector<16x9xf32>
    %34 = vector.extract_strided_slice %29 {offsets = [0, 0], sizes = [16, 9], strides = [1, 1]} : vector<16x18xf32> to vector<16x9xf32>
    %35 = arith.addf %33, %34 : vector<16x9xf32>
    %c1 = arith.constant 1 : index
    %c0_17 = arith.constant 0 : index
    %c0_18 = arith.constant 0 : index
    %36 = vector.load %arg4[%c1, %c0_17, %c0_18] : memref<8x16x128xf32, #tpu.memory_space<vmem>>, vector<1x16x9xf32>
    %37 = vector.shape_cast %36 : vector<1x16x9xf32> to vector<16x9xf32>
    %38 = vector.shape_cast %32 : vector<16x9xf32> to vector<1x16x9xf32>
    tpu.vector_store %arg4[%c1, %c0_17, %c0_18], %38 {strides = array<i32>} : memref<8x16x128xf32, #tpu.memory_space<vmem>>, vector<1x16x9xf32>,
    %c1_19 = arith.constant 1 : index
    %c0_20 = arith.constant 0 : index
    %c9_21 = arith.constant 9 : index
    %39 = vector.load %arg4[%c1_19, %c0_20, %c9_21] : memref<8x16x128xf32, #tpu.memory_space<vmem>>, vector<1x16x9xf32>
    %40 = vector.shape_cast %39 : vector<1x16x9xf32> to vector<16x9xf32>
    %41 = vector.shape_cast %35 : vector<16x9xf32> to vector<1x16x9xf32>
    tpu.vector_store %arg4[%c1_19, %c0_20, %c9_21], %41 {strides = array<i32>} : memref<8x16x128xf32, #tpu.memory_space<vmem>>, vector<1x16x9xf32>,
    %42 = vector.extract_strided_slice %4 {offsets = [2, 0, 0], sizes = [1, 16, 18], strides = [1, 1, 1]} : vector<8x16x18xf32> to vector<1x16x18xf32>
    %43 = vector.shape_cast %42 : vector<1x16x18xf32> to vector<16x18xf32>
    %cst_22 = arith.constant dense<0.000000e+00> : vector<32x18xf32>
    %44 = tpu.matmul %5, %43, %cst_22 {dimension_numbers = #tpu.dot_dimension_numbers<[1], [0], [0], [1], [0, 0, 1, 1], [], []>} : vector<32x16xf32>, vector<16x18xf32>, vector<32x18xf32> -> vector<32x18xf32>
    %45 = vector.extract_strided_slice %44 {offsets = [0, 0], sizes = [16, 18], strides = [1, 1]} : vector<32x18xf32> to vector<16x18xf32>
    %46 = vector.extract_strided_slice %44 {offsets = [16, 0], sizes = [16, 18], strides = [1, 1]} : vector<32x18xf32> to vector<16x18xf32>
    %47 = vector.extract_strided_slice %45 {offsets = [0, 0], sizes = [16, 9], strides = [1, 1]} : vector<16x18xf32> to vector<16x9xf32>
    %48 = vector.extract_strided_slice %46 {offsets = [0, 9], sizes = [16, 9], strides = [1, 1]} : vector<16x18xf32> to vector<16x9xf32>
    %49 = arith.subf %47, %48 : vector<16x9xf32>
    %50 = vector.extract_strided_slice %45 {offsets = [0, 9], sizes = [16, 9], strides = [1, 1]} : vector<16x18xf32> to vector<16x9xf32>
    %51 = vector.extract_strided_slice %46 {offsets = [0, 0], sizes = [16, 9], strides = [1, 1]} : vector<16x18xf32> to vector<16x9xf32>
    %52 = arith.addf %50, %51 : vector<16x9xf32>
    %c2 = arith.constant 2 : index
    %c0_23 = arith.constant 0 : index
    %c0_24 = arith.constant 0 : index
    %53 = vector.load %arg4[%c2, %c0_23, %c0_24] : memref<8x16x128xf32, #tpu.memory_space<vmem>>, vector<1x16x9xf32>
    %54 = vector.shape_cast %53 : vector<1x16x9xf32> to vector<16x9xf32>
    %55 = vector.shape_cast %49 : vector<16x9xf32> to vector<1x16x9xf32>
    tpu.vector_store %arg4[%c2, %c0_23, %c0_24], %55 {strides = array<i32>} : memref<8x16x128xf32, #tpu.memory_space<vmem>>, vector<1x16x9xf32>,
    %c2_25 = arith.constant 2 : index
    %c0_26 = arith.constant 0 : index
    %c9_27 = arith.constant 9 : index
    %56 = vector.load %arg4[%c2_25, %c0_26, %c9_27] : memref<8x16x128xf32, #tpu.memory_space<vmem>>, vector<1x16x9xf32>
    %57 = vector.shape_cast %56 : vector<1x16x9xf32> to vector<16x9xf32>
    %58 = vector.shape_cast %52 : vector<16x9xf32> to vector<1x16x9xf32>
    tpu.vector_store %arg4[%c2_25, %c0_26, %c9_27], %58 {strides = array<i32>} : memref<8x16x128xf32, #tpu.memory_space<vmem>>, vector<1x16x9xf32>,
    %59 = vector.extract_strided_slice %4 {offsets = [3, 0, 0], sizes = [1, 16, 18], strides = [1, 1, 1]} : vector<8x16x18xf32> to vector<1x16x18xf32>
    %60 = vector.shape_cast %59 : vector<1x16x18xf32> to vector<16x18xf32>
    %cst_28 = arith.constant dense<0.000000e+00> : vector<32x18xf32>
    %61 = tpu.matmul %5, %60, %cst_28 {dimension_numbers = #tpu.dot_dimension_numbers<[1], [0], [0], [1], [0, 0, 1, 1], [], []>} : vector<32x16xf32>, vector<16x18xf32>, vector<32x18xf32> -> vector<32x18xf32>
    %62 = vector.extract_strided_slice %61 {offsets = [0, 0], sizes = [16, 18], strides = [1, 1]} : vector<32x18xf32> to vector<16x18xf32>
    %63 = vector.extract_strided_slice %61 {offsets = [16, 0], sizes = [16, 18], strides = [1, 1]} : vector<32x18xf32> to vector<16x18xf32>
    %64 = vector.extract_strided_slice %62 {offsets = [0, 0], sizes = [16, 9], strides = [1, 1]} : vector<16x18xf32> to vector<16x9xf32>
    %65 = vector.extract_strided_slice %63 {offsets = [0, 9], sizes = [16, 9], strides = [1, 1]} : vector<16x18xf32> to vector<16x9xf32>
    %66 = arith.subf %64, %65 : vector<16x9xf32>
    %67 = vector.extract_strided_slice %62 {offsets = [0, 9], sizes = [16, 9], strides = [1, 1]} : vector<16x18xf32> to vector<16x9xf32>
    %68 = vector.extract_strided_slice %63 {offsets = [0, 0], sizes = [16, 9], strides = [1, 1]} : vector<16x18xf32> to vector<16x9xf32>
    %69 = arith.addf %67, %68 : vector<16x9xf32>
    %c3 = arith.constant 3 : index
    %c0_29 = arith.constant 0 : index
    %c0_30 = arith.constant 0 : index
    %70 = vector.load %arg4[%c3, %c0_29, %c0_30] : memref<8x16x128xf32, #tpu.memory_space<vmem>>, vector<1x16x9xf32>
    %71 = vector.shape_cast %70 : vector<1x16x9xf32> to vector<16x9xf32>
    %72 = vector.shape_cast %66 : vector<16x9xf32> to vector<1x16x9xf32>
    tpu.vector_store %arg4[%c3, %c0_29, %c0_30], %72 {strides = array<i32>} : memref<8x16x128xf32, #tpu.memory_space<vmem>>, vector<1x16x9xf32>,
    %c3_31 = arith.constant 3 : index
    %c0_32 = arith.constant 0 : index
    %c9_33 = arith.constant 9 : index
    %73 = vector.load %arg4[%c3_31, %c0_32, %c9_33] : memref<8x16x128xf32, #tpu.memory_space<vmem>>, vector<1x16x9xf32>
    %74 = vector.shape_cast %73 : vector<1x16x9xf32> to vector<16x9xf32>
    %75 = vector.shape_cast %69 : vector<16x9xf32> to vector<1x16x9xf32>
    tpu.vector_store %arg4[%c3_31, %c0_32, %c9_33], %75 {strides = array<i32>} : memref<8x16x128xf32, #tpu.memory_space<vmem>>, vector<1x16x9xf32>,
    %76 = vector.extract_strided_slice %4 {offsets = [4, 0, 0], sizes = [1, 16, 18], strides = [1, 1, 1]} : vector<8x16x18xf32> to vector<1x16x18xf32>
    %77 = vector.shape_cast %76 : vector<1x16x18xf32> to vector<16x18xf32>
    %cst_34 = arith.constant dense<0.000000e+00> : vector<32x18xf32>
    %78 = tpu.matmul %5, %77, %cst_34 {dimension_numbers = #tpu.dot_dimension_numbers<[1], [0], [0], [1], [0, 0, 1, 1], [], []>} : vector<32x16xf32>, vector<16x18xf32>, vector<32x18xf32> -> vector<32x18xf32>
    %79 = vector.extract_strided_slice %78 {offsets = [0, 0], sizes = [16, 18], strides = [1, 1]} : vector<32x18xf32> to vector<16x18xf32>
    %80 = vector.extract_strided_slice %78 {offsets = [16, 0], sizes = [16, 18], strides = [1, 1]} : vector<32x18xf32> to vector<16x18xf32>
    %81 = vector.extract_strided_slice %79 {offsets = [0, 0], sizes = [16, 9], strides = [1, 1]} : vector<16x18xf32> to vector<16x9xf32>
    %82 = vector.extract_strided_slice %80 {offsets = [0, 9], sizes = [16, 9], strides = [1, 1]} : vector<16x18xf32> to vector<16x9xf32>
    %83 = arith.subf %81, %82 : vector<16x9xf32>
    %84 = vector.extract_strided_slice %79 {offsets = [0, 9], sizes = [16, 9], strides = [1, 1]} : vector<16x18xf32> to vector<16x9xf32>
    %85 = vector.extract_strided_slice %80 {offsets = [0, 0], sizes = [16, 9], strides = [1, 1]} : vector<16x18xf32> to vector<16x9xf32>
    %86 = arith.addf %84, %85 : vector<16x9xf32>
    %c4 = arith.constant 4 : index
    %c0_35 = arith.constant 0 : index
    %c0_36 = arith.constant 0 : index
    %87 = vector.load %arg4[%c4, %c0_35, %c0_36] : memref<8x16x128xf32, #tpu.memory_space<vmem>>, vector<1x16x9xf32>
    %88 = vector.shape_cast %87 : vector<1x16x9xf32> to vector<16x9xf32>
    %89 = vector.shape_cast %83 : vector<16x9xf32> to vector<1x16x9xf32>
    tpu.vector_store %arg4[%c4, %c0_35, %c0_36], %89 {strides = array<i32>} : memref<8x16x128xf32, #tpu.memory_space<vmem>>, vector<1x16x9xf32>,
    %c4_37 = arith.constant 4 : index
    %c0_38 = arith.constant 0 : index
    %c9_39 = arith.constant 9 : index
    %90 = vector.load %arg4[%c4_37, %c0_38, %c9_39] : memref<8x16x128xf32, #tpu.memory_space<vmem>>, vector<1x16x9xf32>
    %91 = vector.shape_cast %90 : vector<1x16x9xf32> to vector<16x9xf32>
    %92 = vector.shape_cast %86 : vector<16x9xf32> to vector<1x16x9xf32>
    tpu.vector_store %arg4[%c4_37, %c0_38, %c9_39], %92 {strides = array<i32>} : memref<8x16x128xf32, #tpu.memory_space<vmem>>, vector<1x16x9xf32>,
    %93 = vector.extract_strided_slice %4 {offsets = [5, 0, 0], sizes = [1, 16, 18], strides = [1, 1, 1]} : vector<8x16x18xf32> to vector<1x16x18xf32>
    %94 = vector.shape_cast %93 : vector<1x16x18xf32> to vector<16x18xf32>
    %cst_40 = arith.constant dense<0.000000e+00> : vector<32x18xf32>
    %95 = tpu.matmul %5, %94, %cst_40 {dimension_numbers = #tpu.dot_dimension_numbers<[1], [0], [0], [1], [0, 0, 1, 1], [], []>} : vector<32x16xf32>, vector<16x18xf32>, vector<32x18xf32> -> vector<32x18xf32>
    %96 = vector.extract_strided_slice %95 {offsets = [0, 0], sizes = [16, 18], strides = [1, 1]} : vector<32x18xf32> to vector<16x18xf32>
    %97 = vector.extract_strided_slice %95 {offsets = [16, 0], sizes = [16, 18], strides = [1, 1]} : vector<32x18xf32> to vector<16x18xf32>
    %98 = vector.extract_strided_slice %96 {offsets = [0, 0], sizes = [16, 9], strides = [1, 1]} : vector<16x18xf32> to vector<16x9xf32>
    %99 = vector.extract_strided_slice %97 {offsets = [0, 9], sizes = [16, 9], strides = [1, 1]} : vector<16x18xf32> to vector<16x9xf32>
    %100 = arith.subf %98, %99 : vector<16x9xf32>
    %101 = vector.extract_strided_slice %96 {offsets = [0, 9], sizes = [16, 9], strides = [1, 1]} : vector<16x18xf32> to vector<16x9xf32>
    %102 = vector.extract_strided_slice %97 {offsets = [0, 0], sizes = [16, 9], strides = [1, 1]} : vector<16x18xf32> to vector<16x9xf32>
    %103 = arith.addf %101, %102 : vector<16x9xf32>
    %c5 = arith.constant 5 : index
    %c0_41 = arith.constant 0 : index
    %c0_42 = arith.constant 0 : index
    %104 = vector.load %arg4[%c5, %c0_41, %c0_42] : memref<8x16x128xf32, #tpu.memory_space<vmem>>, vector<1x16x9xf32>
    %105 = vector.shape_cast %104 : vector<1x16x9xf32> to vector<16x9xf32>
    %106 = vector.shape_cast %100 : vector<16x9xf32> to vector<1x16x9xf32>
    tpu.vector_store %arg4[%c5, %c0_41, %c0_42], %106 {strides = array<i32>} : memref<8x16x128xf32, #tpu.memory_space<vmem>>, vector<1x16x9xf32>,
    %c5_43 = arith.constant 5 : index
    %c0_44 = arith.constant 0 : index
    %c9_45 = arith.constant 9 : index
    %107 = vector.load %arg4[%c5_43, %c0_44, %c9_45] : memref<8x16x128xf32, #tpu.memory_space<vmem>>, vector<1x16x9xf32>
    %108 = vector.shape_cast %107 : vector<1x16x9xf32> to vector<16x9xf32>
    %109 = vector.shape_cast %103 : vector<16x9xf32> to vector<1x16x9xf32>
    tpu.vector_store %arg4[%c5_43, %c0_44, %c9_45], %109 {strides = array<i32>} : memref<8x16x128xf32, #tpu.memory_space<vmem>>, vector<1x16x9xf32>,
    %110 = vector.extract_strided_slice %4 {offsets = [6, 0, 0], sizes = [1, 16, 18], strides = [1, 1, 1]} : vector<8x16x18xf32> to vector<1x16x18xf32>
    %111 = vector.shape_cast %110 : vector<1x16x18xf32> to vector<16x18xf32>
    %cst_46 = arith.constant dense<0.000000e+00> : vector<32x18xf32>
    %112 = tpu.matmul %5, %111, %cst_46 {dimension_numbers = #tpu.dot_dimension_numbers<[1], [0], [0], [1], [0, 0, 1, 1], [], []>} : vector<32x16xf32>, vector<16x18xf32>, vector<32x18xf32> -> vector<32x18xf32>
    %113 = vector.extract_strided_slice %112 {offsets = [0, 0], sizes = [16, 18], strides = [1, 1]} : vector<32x18xf32> to vector<16x18xf32>
    %114 = vector.extract_strided_slice %112 {offsets = [16, 0], sizes = [16, 18], strides = [1, 1]} : vector<32x18xf32> to vector<16x18xf32>
    %115 = vector.extract_strided_slice %113 {offsets = [0, 0], sizes = [16, 9], strides = [1, 1]} : vector<16x18xf32> to vector<16x9xf32>
    %116 = vector.extract_strided_slice %114 {offsets = [0, 9], sizes = [16, 9], strides = [1, 1]} : vector<16x18xf32> to vector<16x9xf32>
    %117 = arith.subf %115, %116 : vector<16x9xf32>
    %118 = vector.extract_strided_slice %113 {offsets = [0, 9], sizes = [16, 9], strides = [1, 1]} : vector<16x18xf32> to vector<16x9xf32>
    %119 = vector.extract_strided_slice %114 {offsets = [0, 0], sizes = [16, 9], strides = [1, 1]} : vector<16x18xf32> to vector<16x9xf32>
    %120 = arith.addf %118, %119 : vector<16x9xf32>
    %c6 = arith.constant 6 : index
    %c0_47 = arith.constant 0 : index
    %c0_48 = arith.constant 0 : index
    %121 = vector.load %arg4[%c6, %c0_47, %c0_48] : memref<8x16x128xf32, #tpu.memory_space<vmem>>, vector<1x16x9xf32>
    %122 = vector.shape_cast %121 : vector<1x16x9xf32> to vector<16x9xf32>
    %123 = vector.shape_cast %117 : vector<16x9xf32> to vector<1x16x9xf32>
    tpu.vector_store %arg4[%c6, %c0_47, %c0_48], %123 {strides = array<i32>} : memref<8x16x128xf32, #tpu.memory_space<vmem>>, vector<1x16x9xf32>,
    %c6_49 = arith.constant 6 : index
    %c0_50 = arith.constant 0 : index
    %c9_51 = arith.constant 9 : index
    %124 = vector.load %arg4[%c6_49, %c0_50, %c9_51] : memref<8x16x128xf32, #tpu.memory_space<vmem>>, vector<1x16x9xf32>
    %125 = vector.shape_cast %124 : vector<1x16x9xf32> to vector<16x9xf32>
    %126 = vector.shape_cast %120 : vector<16x9xf32> to vector<1x16x9xf32>
    tpu.vector_store %arg4[%c6_49, %c0_50, %c9_51], %126 {strides = array<i32>} : memref<8x16x128xf32, #tpu.memory_space<vmem>>, vector<1x16x9xf32>,
    %127 = vector.extract_strided_slice %4 {offsets = [7, 0, 0], sizes = [1, 16, 18], strides = [1, 1, 1]} : vector<8x16x18xf32> to vector<1x16x18xf32>
    %128 = vector.shape_cast %127 : vector<1x16x18xf32> to vector<16x18xf32>
    %cst_52 = arith.constant dense<0.000000e+00> : vector<32x18xf32>
    %129 = tpu.matmul %5, %128, %cst_52 {dimension_numbers = #tpu.dot_dimension_numbers<[1], [0], [0], [1], [0, 0, 1, 1], [], []>} : vector<32x16xf32>, vector<16x18xf32>, vector<32x18xf32> -> vector<32x18xf32>
    %130 = vector.extract_strided_slice %129 {offsets = [0, 0], sizes = [16, 18], strides = [1, 1]} : vector<32x18xf32> to vector<16x18xf32>
    %131 = vector.extract_strided_slice %129 {offsets = [16, 0], sizes = [16, 18], strides = [1, 1]} : vector<32x18xf32> to vector<16x18xf32>
    %132 = vector.extract_strided_slice %130 {offsets = [0, 0], sizes = [16, 9], strides = [1, 1]} : vector<16x18xf32> to vector<16x9xf32>
    %133 = vector.extract_strided_slice %131 {offsets = [0, 9], sizes = [16, 9], strides = [1, 1]} : vector<16x18xf32> to vector<16x9xf32>
    %134 = arith.subf %132, %133 : vector<16x9xf32>
    %135 = vector.extract_strided_slice %130 {offsets = [0, 9], sizes = [16, 9], strides = [1, 1]} : vector<16x18xf32> to vector<16x9xf32>
    %136 = vector.extract_strided_slice %131 {offsets = [0, 0], sizes = [16, 9], strides = [1, 1]} : vector<16x18xf32> to vector<16x9xf32>
    %137 = arith.addf %135, %136 : vector<16x9xf32>
    %c7 = arith.constant 7 : index
    %c0_53 = arith.constant 0 : index
    %c0_54 = arith.constant 0 : index
    %138 = vector.load %arg4[%c7, %c0_53, %c0_54] : memref<8x16x128xf32, #tpu.memory_space<vmem>>, vector<1x16x9xf32>
    %139 = vector.shape_cast %138 : vector<1x16x9xf32> to vector<16x9xf32>
    %140 = vector.shape_cast %134 : vector<16x9xf32> to vector<1x16x9xf32>
    tpu.vector_store %arg4[%c7, %c0_53, %c0_54], %140 {strides = array<i32>} : memref<8x16x128xf32, #tpu.memory_space<vmem>>, vector<1x16x9xf32>,
    %c7_55 = arith.constant 7 : index
    %c0_56 = arith.constant 0 : index
    %c9_57 = arith.constant 9 : index
    %141 = vector.load %arg4[%c7_55, %c0_56, %c9_57] : memref<8x16x128xf32, #tpu.memory_space<vmem>>, vector<1x16x9xf32>
    %142 = vector.shape_cast %141 : vector<1x16x9xf32> to vector<16x9xf32>
    %143 = vector.shape_cast %137 : vector<16x9xf32> to vector<1x16x9xf32>
    tpu.vector_store %arg4[%c7_55, %c0_56, %c9_57], %143 {strides = array<i32>} : memref<8x16x128xf32, #tpu.memory_space<vmem>>, vector<1x16x9xf32>,
    return
  }
  func.func @transform_0(%arg0: i32) -> (i32, i32, i32) {
    %c0_i32 = arith.constant 0 : i32
    %c0_i32_0 = arith.constant 0 : i32
    %c0_i32_1 = arith.constant 0 : i32
    return %arg0, %c0_i32, %c0_i32_0 : i32, i32, i32
  }
  func.func @transform_1(%arg0: i32) -> (i32, i32) {
    %c0_i32 = arith.constant 0 : i32
    %c0_i32_0 = arith.constant 0 : i32
    %c0_i32_1 = arith.constant 0 : i32
    return %c0_i32, %c0_i32_0 : i32, i32
  }
  func.func @transform_2(%arg0: i32) -> (i32, i32) {
    %c0_i32 = arith.constant 0 : i32
    %c0_i32_0 = arith.constant 0 : i32
    %c0_i32_1 = arith.constant 0 : i32
    return %c0_i32, %c0_i32_0 : i32, i32
  }
  func.func @transform_3(%arg0: i32) -> (i32, i32, i32) {
    %c0_i32 = arith.constant 0 : i32
    %c0_i32_0 = arith.constant 0 : i32
    %c0_i32_1 = arith.constant 0 : i32
    return %arg0, %c0_i32, %c0_i32_0 : i32, i32, i32
  }
}

</mosaic_0001>

<bundles_post_ra>
// kernel: tpu_custom_call.1
= control target key start
LH: loop header
LB: loop body
LE: loop exit
PB: predicated region body
PF: predicated region fallthrough
CT: control target
= control target key end

     0   :  { %8 = vsyncpa [#allocation3], 0  ;;  %s1739_s0 = inlined_call_operand.hbm [shape: f32[8,16,16], index: 0, kind: input, shape index: {}]   ;;  %s1740_s1 = inlined_call_operand.vmem [shape: f32[16,18], index: 1, kind: input, shape index: {}]   ;;  %s1741_s2 = inlined_call_operand.vmem [shape: f32[32,16], index: 2, kind: input, shape index: {}]   ;;  %s1742_s3 = inlined_call_operand.hbm [shape: f32[8,16,128], index: 3, kind: output, shape index: {}]  }
   0x1   :  { %9 = vsyncpa [#allocation4], 0  ;;  %s1468_s12 = smov [#allocation2]   ;;  %s1420_s16 = scalar_lea.hbm %s1739_s0, 2048 }
   0x2   :  { %s15_s13 = sshll.u32 %s1468_s12, 4  ;;  %p1421_p0 = scmp.ne.s32.totalorder %s1739_s0, %s1420_s16  ;;  %s16_s13 = int_to_ptr.vmem [resolvable:$true] %s15_s13 }
   0x3   :  { %p1424_p1 = scmp.lt.u32.totalorder %s1420_s16, %s1739_s0 }
   0x5   :  { %p1426_p2 = pnand %p1424_p1, %p1421_p0 }
   0x7   :  { %1429 = shalt.err (!%p1426_p2)
}
   0x8   :  { %s1430_s21 = scalar_lea.vmem %s16_s13, 2048  ;;  %p1435_p4 = scmp.lt.s32.totalorder %s16_s13, %s16_s13 }
   0x9   :  { %p1431_p3 = scmp.ne.s32.totalorder %s16_s13, %s1430_s21  ;;  %p1436_p5 = scmp.lt.s32.totalorder %s1430_s21, %s1430_s21 }
   0xb   :  { %p1437_p6 = por %p1436_p5, %p1435_p4 }
   0xd   :  { %p1438_p7 = pnand %p1437_p6, %p1431_p3 }
   0xf   :  { %1441 = shalt.err (!%p1438_p7)
}
  0x10   :  { %s1469_s22 = smov 128   ;;  %s1470_s23 = smov 8  }
  0x11   :  { %21 = dma.hbm_to_vmem [thread:$0]  %s1739_s0, 2048, %s16_s13, [#allocation3], %s1469_s22, %s1469_s22, %s1470_s23  }
  0x12   :  { %1464 = dma.done.wait [#allocation3], 2048  }
  0x13   :  { %1465 = vsyncadd [#allocation3], 4294965248  ;;  %vm47_vm0 = vcmask 130048   ;;  %v45_v0 = vld [vmem:[%s1740_s1] sm:$0xff]  ;;  %v46_v1 = vld [vmem:[%s1740_s1 + $0x8] sm:$0xff]  ;;  %v1471_v47 = vmov 0.0  }
  0x14   :  { %v29_v2 = vld [vmem:[#allocation2] sm:$0xff]  ;;  %v1377_v3 = vpack.c.bf16 %v46_v1, %v45_v0  ;;  %v30_v4 = vld [vmem:[#allocation2 + $0x8] sm:$0xff]  ;;  %v31_v5 = vld [vmem:[#allocation2 + $0x10] sm:$0xff]  ;;  %246 = vst [vmem:[#allocation5 + $0x8] sm:$0xff] %v1471_v47  ;;  %s1473_s9 = smov 119   ;;  %vm376_vm1 = vcmask 72704  }
  0x15   :  { %1273 = vmatprep.mubr.msk.f32.mxu0 %vm47_vm0, %v29_v2  ;;  %v32_v6 = vld [vmem:[#allocation2 + $0x18] sm:$0xff]  ;;  %v33_v7 = vld [vmem:[#allocation2 + $0x20] sm:$0xff]  ;;  %v34_v8 = vld [vmem:[#allocation2 + $0x28] sm:$0xff]  ;;  %245 = vst [vmem:[#allocation5] sm:$0xff] %v1471_v47  ;;  %vm379_vm2 = vcmask 146504   ;;  %s1474_s10 = smov [#allocation5]  }
  0x16   :  { %1378 = vmatprep.subr.bf16.mxu0 %v1377_v3  ;;  %v35_v9 = vld [vmem:[#allocation2 + $0x30] sm:$0xff]  ;;  %v36_v10 = vld [vmem:[#allocation2 + $0x38] sm:$0xff]  ;;  %v37_v11 = vld [vmem:[#allocation2 + $0x40] sm:$0xff]  ;;  %247 = vst [vmem:[#allocation5 + $0x10] sm:$0xff] %v1471_v47  ;;  %s1143_s11 = sshll.u32 %s1474_s10, 4  ;;  %s1144_s11 = int_to_ptr.vmem [resolvable:$true] %s1143_s11 }
  0x17   :  { %1380 = vmatpush3.bf16.msra.mxu0 %v1377_v3  ;;  %v38_v12 = vld [vmem:[#allocation2 + $0x48] sm:$0xff]  ;;  %v39_v13 = vld [vmem:[#allocation2 + $0x50] sm:$0xff]  ;;  %v40_v14 = vld [vmem:[#allocation2 + $0x58] sm:$0xff]  ;;  %248 = vst [vmem:[#allocation5 + $0x18] sm:$0xff] %v1471_v47  ;;  %s1442_s12 = scalar_lea.vmem %s1144_s11, 2048  ;;  %p1447_p9 = scmp.lt.s32.totalorder %s1144_s11, %s1144_s11 }
  0x18   :  { %v41_v15 = vld [vmem:[#allocation2 + $0x60] sm:$0xff]  ;;  %v42_v16 = vld [vmem:[#allocation2 + $0x68] sm:$0xff]  ;;  %v43_v17 = vld [vmem:[#allocation2 + $0x70] sm:$0xff]  ;;  %249 = vst [vmem:[#allocation5 + $0x20] sm:$0xff] %v1471_v47  ;;  %p1443_p8 = scmp.ne.s32.totalorder %s1144_s11, %s1442_s12  ;;  %p1448_p10 = scmp.lt.s32.totalorder %s1442_s12, %s1442_s12 }
  0x19   :  { %v44_v18 = vld [vmem:[#allocation2 + $0x78] sm:$0xff]  ;;  %v1535_v19 = vld [vmem:[%s1741_s2] sm:$0xff]  ;;  %v1544_v25 = vld [vmem:[%s1741_s2 + $0x8] sm:$0xff]  ;;  %250 = vst [vmem:[#allocation5 + $0x28] sm:$0xff] %v1471_v47 }
  0x1a   :  { %1274 = vmatmul.mubr.msk.f32.vlgmr.msra.gmra.mrb[0].mxu0 %vm47_vm0, %v30_v4  ;;  %1301 = vmatprep.mubr.msk.f32.mxu1 %vm47_vm0, %v1535_v19  ;;  %v243_v27 = vld [vmem:[%s1741_s2 + $0x10] sm:$0xff]  ;;  %v244_v30 = vld [vmem:[%s1741_s2 + $0x18] sm:$0xff]  ;;  %251 = vst [vmem:[#allocation5 + $0x30] sm:$0xff] %v1471_v47  ;;  %252 = vst [vmem:[#allocation5 + $0x38] sm:$0xff] %v1471_v47  ;;  %s1472_s2 = smov 9   ;;  %p1449_p11 = por %p1448_p10, %p1447_p9 }
  0x1b   :  { %1276 = vmatprep.mubr.msk.f32.mxu0 %vm47_vm0, %v31_v5  ;;  %253 = vst [vmem:[#allocation5 + $0x40] sm:$0xff] %v1471_v47  ;;  %254 = vst [vmem:[#allocation5 + $0x48] sm:$0xff] %v1471_v47 }
  0x1c   :  { %255 = vst [vmem:[#allocation5 + $0x50] sm:$0xff] %v1471_v47  ;;  %256 = vst [vmem:[#allocation5 + $0x58] sm:$0xff] %v1471_v47  ;;  %p1450_p12 = pnand %p1449_p11, %p1443_p8 }
  0x1d   :  { %257 = vst [vmem:[#allocation5 + $0x60] sm:$0xff] %v1471_v47  ;;  %258 = vst [vmem:[#allocation5 + $0x68] sm:$0xff] %v1471_v47 }
  0x1e   :  { %1277 = vmatmul.mubr.msk.f32.gmra.mrb[2].mxu0 %vm47_vm0, %v32_v6  ;;  %259 = vst [vmem:[#allocation5 + $0x70] sm:$0xff] %v1471_v47  ;;  %260 = vst [vmem:[#allocation5 + $0x78] sm:$0xff] %v1471_v47 }
  0x1f   :  { %1279 = vmatprep.mubr.msk.f32.mxu0 %vm47_vm0, %v33_v7 }
  0x22   :  { %1280 = vmatmul.mubr.msk.f32.gmra.mrb[4].mxu0 %vm47_vm0, %v34_v8 }
  0x23   :  { %1282 = vmatprep.mubr.msk.f32.mxu0 %vm47_vm0, %v35_v9 }
  0x26   :  { %1283 = vmatmul.mubr.msk.f32.gmra.mrb[6].mxu0 %vm47_vm0, %v36_v10 }
  0x27   :  { %1285 = vmatprep.mubr.msk.f32.mxu0 %vm47_vm0, %v37_v11 }
  0x2a   :  { %1286 = vmatmul.mubr.msk.f32.gmra.mrb[8].mxu0 %vm47_vm0, %v38_v12 }
  0x2b   :  { %1288 = vmatprep.mubr.msk.f32.mxu0 %vm47_vm0, %v39_v13 }
  0x2e   :  { %1289 = vmatmul.mubr.msk.f32.gmra.mrb[10].mxu0 %vm47_vm0, %v40_v14 }
  0x2f   :  { %1291 = vmatprep.mubr.msk.f32.mxu0 %vm47_vm0, %v41_v15 }
  0x32   :  { %1292 = vmatmul.mubr.msk.f32.gmra.mrb[12].mxu0 %vm47_vm0, %v42_v16 }
  0x33   :  { %1294 = vmatprep.mubr.msk.f32.mxu0 %vm47_vm0, %v43_v17 }
  0x36   :  { %1295 = vmatmul.mubr.msk.f32.gmra.mrb[14].mxu0 %vm47_vm0, %v44_v18 }
  0x37   :  { %1341 = vmatprep.mubr.msk.f32.mxu0 %vm47_vm0, %v1535_v19 }
  0xed   :  { %v1275_v20 = vpop.f32.mrb[0].mxu0 }
  0xee   :  { %v162_v21 = vpop.f32.mrb[1].mxu0 }
  0xef   :  { %v1381_v22 = vpack.c.bf16 %v1275_v20, %v162_v21 }
  0xf1   :  { %v1278_v23 = vpop.f32.mrb[2].mxu0  ;;  %1382 = vmatprep.subr.bf16.mxu1 %v1381_v22 }
  0xf2   :  { %v172_v24 = vpop.f32.mrb[3].mxu0  ;;  %1384 = vmatpush3.bf16.msra.mxu1 %v1381_v22 }
  0xf3   :  { %v1385_v26 = vpack.c.bf16 %v1278_v23, %v172_v24 }
  0xf5   :  { %v1281_v28 = vpop.f32.mrb[4].mxu0  ;;  %1302 = vmatmul.mubr.msk.f32.vlgmr.msra.gmra.mrb[0].mxu1 %vm47_vm0, %v1544_v25  ;;  %1386 = vmatprep.subr.bf16.mxu1 %v1385_v26 }
  0xf6   :  { %v182_v29 = vpop.f32.mrb[5].mxu0  ;;  %1388 = vmatpush3.bf16.msra.mxu1 %v1385_v26  ;;  %1304 = vmatprep.mubr.msk.f32.mxu1 %vm47_vm0, %v243_v27 }
  0xf7   :  { %v1389_v31 = vpack.c.bf16 %v1281_v28, %v182_v29 }
  0xf9   :  { %v1284_v32 = vpop.f32.mrb[6].mxu0  ;;  %1305 = vmatmul.mubr.msk.f32.gmra.mrb[2].mxu1 %vm47_vm0, %v244_v30  ;;  %1390 = vmatprep.subr.bf16.mxu1 %v1389_v31 }
  0xfa   :  { %v192_v33 = vpop.f32.mrb[7].mxu0  ;;  %1311 = vmatprep.mubr.msk.f32.mxu1 %vm47_vm0, %v1535_v19 }
  0xfb   :  { %v1393_v34 = vpack.c.bf16 %v1284_v32, %v192_v33 }
  0xfd   :  { %v1287_v35 = vpop.f32.mrb[8].mxu0  ;;  %1312 = vmatmul.mubr.msk.f32.vlgmr.msra.gmra.mrb[4].mxu1 %vm47_vm0, %v1544_v25 }
  0xfe   :  { %1392 = vmatpush3.bf16.msra.mxu1 %v1389_v31  ;;  %v202_v36 = vpop.f32.mrb[9].mxu0  ;;  %1314 = vmatprep.mubr.msk.f32.mxu1 %vm47_vm0, %v243_v27 }
  0xff   :  { %v1397_v37 = vpack.c.bf16 %v1287_v35, %v202_v36  ;;  %1394 = vmatprep.subr.bf16.mxu1 %v1393_v34 }
 0x101   :  { %1315 = vmatmul.mubr.msk.f32.gmra.mrb[6].mxu1 %vm47_vm0, %v244_v30  ;;  %1398 = vmatprep.subr.bf16.mxu0 %v1397_v37  ;;  %v1290_v38 = vpop.f32.mrb[10].mxu0 }
 0x102   :  { %1400 = vmatpush3.bf16.msra.mxu0 %v1397_v37  ;;  %1321 = vmatprep.mubr.msk.f32.mxu1 %vm47_vm0, %v1535_v19  ;;  %v212_v39 = vpop.f32.mrb[11].mxu0 }
 0x103   :  { %v1401_v40 = vpack.c.bf16 %v1290_v38, %v212_v39 }
 0x105   :  { %1322 = vmatmul.mubr.msk.f32.vlgmr.msra.gmra.mrb[8].mxu1 %vm47_vm0, %v1544_v25  ;;  %1342 = vmatmul.mubr.msk.f32.vlgmr.msra.gmra.mrb[16].mxu0 %vm47_vm0, %v1544_v25  ;;  %v1293_v41 = vpop.f32.mrb[12].mxu0 }
 0x106   :  { %1396 = vmatpush3.bf16.msra.mxu1 %v1393_v34  ;;  %1324 = vmatprep.mubr.msk.f32.mxu1 %vm47_vm0, %v243_v27  ;;  %v222_v42 = vpop.f32.mrb[13].mxu0 }
 0x107   :  { %1344 = vmatprep.mubr.msk.f32.mxu0 %vm47_vm0, %v243_v27  ;;  %v1405_v43 = vpack.c.bf16 %v1293_v41, %v222_v42  ;;  %1402 = vmatprep.subr.bf16.mxu1 %v1401_v40 }
 0x109   :  { %1325 = vmatmul.mubr.msk.f32.gmra.mrb[10].mxu1 %vm47_vm0, %v244_v30  ;;  %1345 = vmatmul.mubr.msk.f32.gmra.mrb[18].mxu0 %vm47_vm0, %v244_v30  ;;  %v1296_v44 = vpop.f32.mrb[14].mxu0 }
 0x10a   :  { %1331 = vmatprep.mubr.msk.f32.mxu1 %vm47_vm0, %v1535_v19  ;;  %1406 = vmatprep.subr.bf16.mxu0 %v1405_v43  ;;  %v232_v45 = vpop.f32.mrb[15].mxu0 }
 0x10b   :  { %1408 = vmatpush3.bf16.msra.mxu0 %v1405_v43  ;;  %1361 = vmatprep.mubr.msk.f32.mxu0 %vm47_vm0, %v1535_v19  ;;  %v1409_v46 = vpack.c.bf16 %v1296_v44, %v232_v45 }
 0x10d   :  { %1332 = vmatmul.mubr.msk.f32.vlgmr.msra.gmra.mrb[12].mxu1 %vm47_vm0, %v1544_v25 }
 0x10e   :  { %1334 = vmatprep.mubr.msk.f32.mxu1 %vm47_vm0, %v243_v27  ;;  %1362 = vmatmul.mubr.msk.f32.vlgmr.msra.gmra.mrb[20].mxu0 %vm47_vm0, %v1544_v25 }
 0x10f   :  { %1364 = vmatprep.mubr.msk.f32.mxu0 %vm47_vm0, %v243_v27  ;;  %1404 = vmatpush3.bf16.msra.mxu1 %v1401_v40 }
 0x110   :  { %1410 = vmatprep.subr.bf16.mxu1 %v1409_v46 }
 0x111   :  { %1335 = vmatmul.mubr.msk.f32.gmra.mrb[14].mxu1 %vm47_vm0, %v244_v30 }
 0x112   :  { %1365 = vmatmul.mubr.msk.f32.gmra.mrb[22].mxu0 %vm47_vm0, %v244_v30  ;;  %1351 = vmatprep.mubr.msk.f32.mxu1 %vm47_vm0, %v1535_v19 }
 0x115   :  { %1352 = vmatmul.mubr.msk.f32.vlgmr.msra.gmra.mrb[16].mxu1 %vm47_vm0, %v1544_v25 }
 0x116   :  { %1354 = vmatprep.mubr.msk.f32.mxu1 %vm47_vm0, %v243_v27  ;;  %1412 = vmatpush3.bf16.msra.mxu1 %v1409_v46 }
 0x119   :  { %1355 = vmatmul.mubr.msk.f32.gmra.mrb[18].mxu1 %vm47_vm0, %v244_v30 }
 0x11a   :  { %1371 = vmatprep.mubr.msk.f32.mxu1 %vm47_vm0, %v1535_v19 }
 0x11d   :  { %1372 = vmatmul.mubr.msk.f32.vlgmr.msra.gmra.mrb[20].mxu1 %vm47_vm0, %v1544_v25 }
 0x11e   :  { %1374 = vmatprep.mubr.msk.f32.mxu1 %vm47_vm0, %v243_v27 }
 0x121   :  { %1375 = vmatmul.mubr.msk.f32.gmra.mrb[22].mxu1 %vm47_vm0, %v244_v30 }
 0x1c8   :  { %v1596_v48 = vpop.f32.mrb[0].mxu1 }
 0x1c9   :  { %v1598_v49 = vpop.f32.mrb[1].mxu1 }
 0x1cc   :  { %v1306_v50 = vpop.f32.mrb[2].mxu1 }
 0x1cd   :  { %370 = vrot.lane.b32.xlu1 %v1306_v50, %s1472_s2  ;;  %362 = vrot.lane.b32.xlu0 %v1306_v50, %s1473_s9  ;;  %v349_v51 = vpop.f32.mrb[3].mxu1 }
 0x1d0   :  { %v1602_v52 = vpop.f32.mrb[4].mxu1 }
 0x1d1   :  { %360 = vrot.lane.b32.xlu0 %v349_v51, %s1473_s9  ;;  %v1605_v53 = vpop.f32.mrb[5].mxu1 }
 0x1d4   :  { %v1316_v54 = vpop.f32.mrb[6].mxu1 }
 0x1d5   :  { %368 = vrot.lane.b32.xlu0 %v349_v51, %s1472_s2  ;;  %471 = vrot.lane.b32.xlu1 %v1316_v54, %s1473_s9  ;;  %v458_v55 = vpop.f32.mrb[7].mxu1 }
 0x1d8   :  { %v1609_v56 = vpop.f32.mrb[8].mxu1  ;;  %v1611_v57 = vpop.f32.mrb[16].mxu0 }
 0x1d9   :  { %479 = vrot.lane.b32.xlu1 %v1316_v54, %s1472_s2  ;;  %477 = vrot.lane.b32.xlu0 %v458_v55, %s1472_s2  ;;  %v1615_v58 = vpop.f32.mrb[9].mxu1  ;;  %v1617_v59 = vpop.f32.mrb[17].mxu0 }
 0x1dc   :  { %v1326_v60 = vpop.f32.mrb[10].mxu1  ;;  %v1346_v61 = vpop.f32.mrb[18].mxu0 }
 0x1dd   :  { %469 = vrot.lane.b32.xlu1 %v458_v55, %s1473_s9  ;;  %v566_v62 = vpop.f32.mrb[11].mxu1  ;;  %v782_v63 = vpop.f32.mrb[19].mxu0 }
 0x1de   :  { %577 = vrot.lane.b32.xlu0 %v566_v62, %s1473_s9 }
 0x1e0   :  { %v1621_v0 = vpop.f32.mrb[12].mxu1 }
 0x1e1   :  { %579 = vrot.lane.b32.xlu1 %v1326_v60, %s1473_s9  ;;  %v1624_v1 = vpop.f32.mrb[13].mxu1  ;;  %v1626_v2 = vpop.f32.mrb[20].mxu0 }
 0x1e2   :  { %793 = vrot.lane.b32.xlu0 %v782_v63, %s1473_s9  ;;  %v1629_v3 = vpop.f32.mrb[21].mxu0 }
 0x1e4   :  { %v1336_v4 = vpop.f32.mrb[14].mxu1 }
 0x1e5   :  { %795 = vrot.lane.b32.xlu1 %v1346_v61, %s1473_s9  ;;  %v674_v5 = vpop.f32.mrb[15].mxu1  ;;  %v1366_v6 = vpop.f32.mrb[22].mxu0 }
 0x1e6   :  { %585 = vrot.lane.b32.xlu0 %v566_v62, %s1472_s2  ;;  %v998_v7 = vpop.f32.mrb[23].mxu0 }
 0x1e8   :  { %v1633_v8 = vpop.f32.mrb[16].mxu1 }
 0x1e9   :  { %587 = vrot.lane.b32.xlu1 %v1326_v60, %s1472_s2  ;;  %v1636_v9 = vpop.f32.mrb[17].mxu1 }
 0x1ea   :  { %801 = vrot.lane.b32.xlu0 %v782_v63, %s1472_s2 }
 0x1ec   :  { %v1356_v10 = vpop.f32.mrb[18].mxu1 }
 0x1ed   :  { %803 = vrot.lane.b32.xlu1 %v1346_v61, %s1472_s2  ;;  %v890_v11 = vpop.f32.mrb[19].mxu1 }
 0x1ee   :  { %685 = vrot.lane.b32.xlu0 %v674_v5, %s1473_s9 }
 0x1f0   :  { %v1641_v12 = vpop.f32.mrb[20].mxu1 }
 0x1f1   :  { %687 = vrot.lane.b32.xlu1 %v1336_v4, %s1473_s9  ;;  %v1644_v13 = vpop.f32.mrb[21].mxu1 }
 0x1f2   :  { %1009 = vrot.lane.b32.xlu0 %v998_v7, %s1473_s9 }
 0x1f4   :  { %v1376_v14 = vpop.f32.mrb[22].mxu1 }
 0x1f5   :  { %1011 = vrot.lane.b32.xlu1 %v1366_v6, %s1473_s9  ;;  %v1106_v15 = vpop.f32.mrb[23].mxu1 }
 0x1f6   :  { %693 = vrot.lane.b32.xlu0 %v674_v5, %s1472_s2 }
 0x1f9   :  { %695 = vrot.lane.b32.xlu1 %v1336_v4, %s1472_s2 }
 0x1fa   :  { %1017 = vrot.lane.b32.xlu0 %v998_v7, %s1472_s2 }
 0x1fd   :  { %1019 = vrot.lane.b32.xlu1 %v1366_v6, %s1472_s2 }
 0x1fe   :  { %901 = vrot.lane.b32.xlu0 %v890_v11, %s1473_s9 }
 0x201   :  { %903 = vrot.lane.b32.xlu1 %v1356_v10, %s1473_s9 }
 0x202   :  { %909 = vrot.lane.b32.xlu0 %v890_v11, %s1472_s2 }
 0x205   :  { %911 = vrot.lane.b32.xlu1 %v1356_v10, %s1472_s2 }
 0x206   :  { %1117 = vrot.lane.b32.xlu0 %v1106_v15, %s1473_s9 }
 0x209   :  { %1119 = vrot.lane.b32.xlu1 %v1376_v14, %s1473_s9 }
 0x20a   :  { %1125 = vrot.lane.b32.xlu0 %v1106_v15, %s1472_s2 }
 0x20d   :  { %1127 = vrot.lane.b32.xlu1 %v1376_v14, %s1472_s2 }
 0x23f   :  { %v371_v16 = vpop.permute.xlu1 %370  ;;  %v363_v17 = vpop.permute.xlu0 %362 }
 0x240   :  { %v375_v18 = vadd.f32 %v1596_v48, %v371_v16  ;;  %v367_v19 = vsub.f32 %v1596_v48, %v363_v17 }
 0x242   :  { %378 = vst.msk [vmem:[#allocation5 + $0x8] sm:$0xff] %vm376_vm1, %v367_v19 }
 0x243   :  { %381 = vst.msk [vmem:[#allocation5 + $0x8] sm:$0xff] %vm379_vm2, %v375_v18  ;;  %v361_v20 = vpop.permute.xlu0 %360 }
 0x244   :  { %v366_v21 = vsub.f32 %v1598_v49, %v361_v20 }
 0x246   :  { %377 = vst.msk [vmem:[#allocation5] sm:$0xff] %vm376_vm1, %v366_v21 }
 0x247   :  { %v369_v22 = vpop.permute.xlu0 %368  ;;  %v472_v23 = vpop.permute.xlu1 %471 }
 0x248   :  { %v374_v24 = vadd.f32 %v369_v22, %v1598_v49  ;;  %v476_v25 = vsub.f32 %v1602_v52, %v472_v23 }
 0x24a   :  { %380 = vst.msk [vmem:[#allocation5] sm:$0xff] %vm379_vm2, %v374_v24 }
 0x24b   :  { %487 = vst.msk [vmem:[#allocation5 + $0x18] sm:$0xff] %vm376_vm1, %v476_v25  ;;  %v480_v26 = vpop.permute.xlu1 %479  ;;  %v478_v27 = vpop.permute.xlu0 %477 }
 0x24c   :  { %v484_v28 = vadd.f32 %v1602_v52, %v480_v26  ;;  %v483_v32 = vadd.f32 %v478_v27, %v1605_v53 }
 0x24e   :  { %489 = vst.msk [vmem:[#allocation5 + $0x18] sm:$0xff] %vm379_vm2, %v484_v28 }
 0x24f   :  { %v470_v29 = vpop.permute.xlu1 %469 }
 0x250   :  { %v475_v30 = vsub.f32 %v1605_v53, %v470_v29  ;;  %v578_v31 = vpop.permute.xlu0 %577 }
 0x251   :  { %v583_v33 = vsub.f32 %v1615_v58, %v578_v31 }
 0x252   :  { %486 = vst.msk [vmem:[#allocation5 + $0x10] sm:$0xff] %vm376_vm1, %v475_v30 }
 0x253   :  { %488 = vst.msk [vmem:[#allocation5 + $0x10] sm:$0xff] %vm379_vm2, %v483_v32  ;;  %v580_v34 = vpop.permute.xlu1 %579 }
 0x254   :  { %594 = vst.msk [vmem:[#allocation5 + $0x20] sm:$0xff] %vm376_vm1, %v583_v33  ;;  %v584_v35 = vsub.f32 %v1609_v56, %v580_v34  ;;  %v794_v36 = vpop.permute.xlu0 %793 }
 0x255   :  { %v799_v37 = vsub.f32 %v1617_v59, %v794_v36 }
 0x256   :  { %595 = vst.msk [vmem:[#allocation5 + $0x28] sm:$0xff] %vm376_vm1, %v584_v35 }
 0x257   :  { %810 = vst.msk [vmem:[#allocation5 + $0x40] sm:$0xff] %vm376_vm1, %v799_v37  ;;  %v796_v38 = vpop.permute.xlu1 %795 }
 0x258   :  { %v800_v39 = vsub.f32 %v1611_v57, %v796_v38  ;;  %v586_v40 = vpop.permute.xlu0 %585 }
 0x259   :  { %v591_v41 = vadd.f32 %v586_v40, %v1615_v58 }
 0x25a   :  { %811 = vst.msk [vmem:[#allocation5 + $0x48] sm:$0xff] %vm376_vm1, %v800_v39 }
 0x25b   :  { %596 = vst.msk [vmem:[#allocation5 + $0x20] sm:$0xff] %vm379_vm2, %v591_v41  ;;  %v588_v42 = vpop.permute.xlu1 %587 }
 0x25c   :  { %v592_v43 = vadd.f32 %v1609_v56, %v588_v42  ;;  %v802_v44 = vpop.permute.xlu0 %801 }
 0x25d   :  { %v807_v45 = vadd.f32 %v802_v44, %v1617_v59 }
 0x25e   :  { %597 = vst.msk [vmem:[#allocation5 + $0x28] sm:$0xff] %vm379_vm2, %v592_v43 }
 0x25f   :  { %812 = vst.msk [vmem:[#allocation5 + $0x40] sm:$0xff] %vm379_vm2, %v807_v45  ;;  %v804_v46 = vpop.permute.xlu1 %803 }
 0x260   :  { %v808_v47 = vadd.f32 %v1611_v57, %v804_v46  ;;  %v686_v48 = vpop.permute.xlu0 %685 }
 0x261   :  { %v691_v49 = vsub.f32 %v1624_v1, %v686_v48 }
 0x262   :  { %813 = vst.msk [vmem:[#allocation5 + $0x48] sm:$0xff] %vm379_vm2, %v808_v47 }
 0x263   :  { %702 = vst.msk [vmem:[#allocation5 + $0x30] sm:$0xff] %vm376_vm1, %v691_v49  ;;  %v688_v50 = vpop.permute.xlu1 %687 }
 0x264   :  { %v692_v51 = vsub.f32 %v1621_v0, %v688_v50  ;;  %v1010_v52 = vpop.permute.xlu0 %1009 }
 0x265   :  { %v1015_v53 = vsub.f32 %v1629_v3, %v1010_v52 }
 0x266   :  { %703 = vst.msk [vmem:[#allocation5 + $0x38] sm:$0xff] %vm376_vm1, %v692_v51 }
 0x267   :  { %1026 = vst.msk [vmem:[#allocation5 + $0x60] sm:$0xff] %vm376_vm1, %v1015_v53  ;;  %v1012_v54 = vpop.permute.xlu1 %1011 }
 0x268   :  { %v1016_v55 = vsub.f32 %v1626_v2, %v1012_v54  ;;  %v694_v56 = vpop.permute.xlu0 %693 }
 0x269   :  { %v699_v57 = vadd.f32 %v694_v56, %v1624_v1 }
 0x26a   :  { %1027 = vst.msk [vmem:[#allocation5 + $0x68] sm:$0xff] %vm376_vm1, %v1016_v55 }
 0x26b   :  { %704 = vst.msk [vmem:[#allocation5 + $0x30] sm:$0xff] %vm379_vm2, %v699_v57  ;;  %v696_v58 = vpop.permute.xlu1 %695 }
 0x26c   :  { %v700_v59 = vadd.f32 %v1621_v0, %v696_v58  ;;  %v1018_v60 = vpop.permute.xlu0 %1017 }
 0x26d   :  { %v1023_v61 = vadd.f32 %v1018_v60, %v1629_v3 }
 0x26e   :  { %705 = vst.msk [vmem:[#allocation5 + $0x38] sm:$0xff] %vm379_vm2, %v700_v59 }
 0x26f   :  { %1028 = vst.msk [vmem:[#allocation5 + $0x60] sm:$0xff] %vm379_vm2, %v1023_v61  ;;  %v1020_v62 = vpop.permute.xlu1 %1019 }
 0x270   :  { %v1024_v63 = vadd.f32 %v1626_v2, %v1020_v62  ;;  %v902_v4 = vpop.permute.xlu0 %901 }
 0x271   :  { %v907_v1 = vsub.f32 %v1636_v9, %v902_v4 }
 0x272   :  { %1029 = vst.msk [vmem:[#allocation5 + $0x68] sm:$0xff] %vm379_vm2, %v1024_v63 }
 0x273   :  { %918 = vst.msk [vmem:[#allocation5 + $0x50] sm:$0xff] %vm376_vm1, %v907_v1  ;;  %v904_v5 = vpop.permute.xlu1 %903 }
 0x274   :  { %v908_v0 = vsub.f32 %v1633_v8, %v904_v5  ;;  %v910_v6 = vpop.permute.xlu0 %909 }
 0x275   :  { %v915_v3 = vadd.f32 %v910_v6, %v1636_v9 }
 0x276   :  { %919 = vst.msk [vmem:[#allocation5 + $0x58] sm:$0xff] %vm376_vm1, %v908_v0 }
 0x277   :  { %920 = vst.msk [vmem:[#allocation5 + $0x50] sm:$0xff] %vm379_vm2, %v915_v3  ;;  %v912_v7 = vpop.permute.xlu1 %911 }
 0x278   :  { %v916_v2 = vadd.f32 %v1633_v8, %v912_v7  ;;  %v1118_v10 = vpop.permute.xlu0 %1117 }
 0x279   :  { %v1123_v11 = vsub.f32 %v1644_v13, %v1118_v10 }
 0x27a   :  { %921 = vst.msk [vmem:[#allocation5 + $0x58] sm:$0xff] %vm379_vm2, %v916_v2 }
 0x27b   :  { %1134 = vst.msk [vmem:[#allocation5 + $0x70] sm:$0xff] %vm376_vm1, %v1123_v11  ;;  %v1120_v14 = vpop.permute.xlu1 %1119 }
 0x27c   :  { %v1124_v15 = vsub.f32 %v1641_v12, %v1120_v14  ;;  %v1126_v16 = vpop.permute.xlu0 %1125 }
 0x27d   :  { %v1131_v9 = vadd.f32 %v1126_v16, %v1644_v13 }
 0x27e   :  { %1135 = vst.msk [vmem:[#allocation5 + $0x78] sm:$0xff] %vm376_vm1, %v1124_v15 }
 0x27f   :  { %1136 = vst.msk [vmem:[#allocation5 + $0x70] sm:$0xff] %vm379_vm2, %v1131_v9  ;;  %v1128_v8 = vpop.permute.xlu1 %1127 }
 0x280   :  { %v1132_v17 = vadd.f32 %v1641_v12, %v1128_v8 }
 0x282   :  { %1137 = vst.msk [vmem:[#allocation5 + $0x78] sm:$0xff] %vm379_vm2, %v1132_v17 }
 0x283   :  { %1453 = shalt.err (!%p1450_p12)
}
 0x284   :  { %s1454_s15 = scalar_lea.hbm %s1742_s3, 2048 }
 0x285   :  { %p1455_p13 = scmp.ne.s32.totalorder %s1742_s3, %s1454_s15  ;;  %p1458_p0 = scmp.lt.u32.totalorder %s1454_s15, %s1742_s3 }
 0x287   :  { %p1460_p1 = pnand %p1458_p0, %p1455_p13 }
 0x289   :  { %1463 = shalt.err (!%p1460_p1)
}
 0x28a   :  { %1149 = dma.vmem_to_hbm [thread:$0]  %s1144_s11, 2048, %s1742_s3, [#allocation4], %s1469_s22, %s1469_s22, %s1470_s23  }
 0x28b   :  { %1466 = dma.done.wait [#allocation4], 2048  }
 0x28c   :  { %1467 = vsyncadd [#allocation4], 4294965248 }
 0x28d   :  { %1153 = vsyncpa [#allocation3], 1 }
 0x28e   :  { %1154 = vsyncpa [#allocation4], 1 }

</bundles_post_ra>
